<compile_context>
chip_gen: v7x
topology: tpu7x:2x2x1
jax: 0.10.0
libtpu: 0.0.40
codegen_flags: <defaults>
</compile_context>

<pallas_src>
import functools

import jax
import jax.numpy as jnp
from jax.experimental import pallas as pl
from jax.experimental.pallas import tpu as pltpu


def _round_up(n, m):
    return ((n + m - 1) // m) * m


def _mlp_kernel(x_ref, w1_ref, b1_ref, w2_ref, b2_ref, w3_ref, b3_ref,
                w4_ref, b4_ref, o_ref):
    # fc1 + relu (f32 operands, f32 accumulation)
    h = jnp.dot(x_ref[...], w1_ref[...], preferred_element_type=jnp.float32)
    h = jnp.maximum(h + b1_ref[...], 0.0)
    # fc2 + relu
    h = jnp.dot(h, w2_ref[...], preferred_element_type=jnp.float32)
    h = jnp.maximum(h + b2_ref[...], 0.0)
    # fc3 + relu
    h = jnp.dot(h, w3_ref[...], preferred_element_type=jnp.float32)
    h = jnp.maximum(h + b3_ref[...], 0.0)
    # fc4 (no activation)
    h = jnp.dot(h, w4_ref[...], preferred_element_type=jnp.float32)
    o_ref[...] = (h + b4_ref[...]).astype(o_ref.dtype)


@functools.partial(jax.jit, static_argnames=("block_b",))
def model5_forward(x, params, block_b=None):
    """x: (B, input_dim) float32. params: dict of (w1,b1,...,w4,b4), all f32."""
    B, input_dim = x.shape
    num_classes = params["w4"].shape[1]

    if block_b is None:
        if B <= 256:
            # One grid step: no pipeline prologue/epilogue for tiny batches.
            block_b = _round_up(B, 8)
        else:
            # >= 2 "parallel" grid steps so megacore (v7x) can shard them,
            # capped at 512 rows (diminishing roofline returns beyond that,
            # and smaller tiles mean less vreg pressure + less tail padding).
            block_b = min(512, _round_up(pl.cdiv(B, 2), 8))

    grid = (pl.cdiv(B, block_b),)

    w1, b1 = params["w1"], params["b1"]
    w2, b2 = params["w2"], params["b2"]
    w3, b3 = params["w3"], params["b3"]
    w4, b4 = params["w4"], params["b4"]

    # Weights/biases: full array every step with a constant block index, so
    # they stay resident in VMEM and are not re-fetched per grid step.
    def full_spec(shape):
        return pl.BlockSpec(shape, lambda i: (0,) * len(shape))

    flops = 2 * B * (input_dim * 64 + 64 * 32 + 32 * 16 + 16 * num_classes)
    bytes_accessed = (
        B * input_dim * 4                       # x stream (f32, read once)
        + B * num_classes * 4                   # output (f32)
        + sum(w.size * 4 for w in (w1, w2, w3, w4))
        + sum(b.size * 4 for b in (b1, b2, b3, b4)))

    return pl.pallas_call(
        _mlp_kernel,
        out_shape=jax.ShapeDtypeStruct((B, num_classes), jnp.float32),
        grid_spec=pltpu.PrefetchScalarGridSpec(
            num_scalar_prefetch=0,
            grid=grid,
            in_specs=[
                pl.BlockSpec((block_b, input_dim), lambda i: (i, 0)),
                full_spec(w1.shape), full_spec(b1.shape),
                full_spec(w2.shape), full_spec(b2.shape),
                full_spec(w3.shape), full_spec(b3.shape),
                full_spec(w4.shape), full_spec(b4.shape),
            ],
            out_specs=pl.BlockSpec((block_b, num_classes), lambda i: (i, 0)),
        ),
        compiler_params=pltpu.CompilerParams(
            dimension_semantics=("parallel",)),
        cost_estimate=pl.CostEstimate(
            flops=flops, transcendentals=0, bytes_accessed=bytes_accessed),
    )(x, w1, b1, w2, b2, w3, b3, w4, b4)


def init_params(key, input_dim, num_classes):
    """Deterministic init mimicking nn.Linear's U(-1/sqrt(fan_in), 1/sqrt(fan_in)).

    Weights are stored as (in_features, out_features); biases as (1, out)."""
    dims = [(input_dim, 64), (64, 32), (32, 16), (16, num_classes)]
    params = {}
    for idx, (fan_in, fan_out) in enumerate(dims, start=1):
        key, kw, kb = jax.random.split(key, 3)
        bound = 1.0 / jnp.sqrt(jnp.float32(fan_in))
        params[f"w{idx}"] = jax.random.uniform(
            kw, (fan_in, fan_out), jnp.float32, minval=-bound, maxval=bound)
        params[f"b{idx}"] = jax.random.uniform(
            kb, (1, fan_out), jnp.float32, minval=-bound, maxval=bound)
    return params


def reference_forward(x, params):
    """Pure-JAX f32 reference (matches the PyTorch Model5 forward)."""
    h = jnp.maximum(jnp.dot(x, params["w1"]) + params["b1"], 0.0)
    h = jnp.maximum(jnp.dot(h, params["w2"]) + params["b2"], 0.0)
    h = jnp.maximum(jnp.dot(h, params["w3"]) + params["b3"], 0.0)
    return jnp.dot(h, params["w4"]) + params["b4"]


if __name__ == "__main__":
    input_dim = 32
    num_classes = 10

    key = jax.random.PRNGKey(0)
    key, kx1, kx2 = jax.random.split(key, 3)
    params = init_params(key, input_dim, num_classes)

    # --- small-batch check (single grid step path) ---
    batch = 16
    x = jax.random.normal(kx1, (batch, input_dim), jnp.float32)
    out = jax.block_until_ready(model5_forward(x, params))
    assert out.shape == (batch, num_classes), out.shape
    ref = reference_forward(x, params)
    assert jnp.allclose(out, ref, atol=1e-3, rtol=1e-3), \
        "mismatch vs f32 reference (small batch)"

    # --- larger ragged batch: multi-step 'parallel' grid + padded last tile ---
    batch2 = 1030  # -> block_b=512, 3 grid steps, last tile partial
    x2 = jax.random.normal(kx2, (batch2, input_dim), jnp.float32)
    out2 = jax.block_until_ready(model5_forward(x2, params))
    assert out2.shape == (batch2, num_classes), out2.shape
    ref2 = reference_forward(x2, params)
    assert jnp.allclose(out2, ref2, atol=1e-3, rtol=1e-3), \
        "mismatch vs f32 reference (large batch)"

    print("KERNEL_OK")
</pallas_src>

<mosaic_0001>
module attributes {stable_mosaic.version = 11 : i64} {
  func.func @_mlp_kernel(%arg0: i32, %arg1: memref<16x32xf32, #tpu.memory_space<vmem>>, %arg2: memref<32x64xf32, #tpu.memory_space<vmem>>, %arg3: memref<1x64xf32, #tpu.memory_space<vmem>>, %arg4: memref<64x32xf32, #tpu.memory_space<vmem>>, %arg5: memref<1x32xf32, #tpu.memory_space<vmem>>, %arg6: memref<32x16xf32, #tpu.memory_space<vmem>>, %arg7: memref<1x16xf32, #tpu.memory_space<vmem>>, %arg8: memref<16x10xf32, #tpu.memory_space<vmem>>, %arg9: memref<1x10xf32, #tpu.memory_space<vmem>>, %arg10: memref<16x10xf32, #tpu.memory_space<vmem>>) attributes {dimension_semantics = [#tpu.dimension_semantics<parallel>], iteration_bounds = array<i64: 1>, scalar_prefetch = 0 : i64, scratch_operands = 0 : i64, tpu.core_type = #tpu.core_type<tc>, window_params = [{transform_indices = @transform_0, window_bounds = array<i64: 16, 32>}, {pipeline_mode = #tpu.pipeline_mode<synchronous>, transform_indices = @transform_1, window_bounds = array<i64: 32, 64>}, {pipeline_mode = #tpu.pipeline_mode<synchronous>, transform_indices = @transform_2, window_bounds = array<i64: 1, 64>}, {pipeline_mode = #tpu.pipeline_mode<synchronous>, transform_indices = @transform_3, window_bounds = array<i64: 64, 32>}, {pipeline_mode = #tpu.pipeline_mode<synchronous>, transform_indices = @transform_4, window_bounds = array<i64: 1, 32>}, {pipeline_mode = #tpu.pipeline_mode<synchronous>, transform_indices = @transform_5, window_bounds = array<i64: 32, 16>}, {pipeline_mode = #tpu.pipeline_mode<synchronous>, transform_indices = @transform_6, window_bounds = array<i64: 1, 16>}, {pipeline_mode = #tpu.pipeline_mode<synchronous>, transform_indices = @transform_7, window_bounds = array<i64: 16, 10>}, {pipeline_mode = #tpu.pipeline_mode<synchronous>, transform_indices = @transform_8, window_bounds = array<i64: 1, 10>}, {transform_indices = @transform_9, window_bounds = array<i64: 16, 10>}]} {
    %c0 = arith.constant 0 : index
    %c0_0 = arith.constant 0 : index
    %0 = vector.load %arg1[%c0, %c0_0] : memref<16x32xf32, #tpu.memory_space<vmem>>, vector<16x32xf32>
    %c0_1 = arith.constant 0 : index
    %c0_2 = arith.constant 0 : index
    %1 = vector.load %arg2[%c0_1, %c0_2] : memref<32x64xf32, #tpu.memory_space<vmem>>, vector<32x64xf32>
    %cst = arith.constant dense<0.000000e+00> : vector<16x64xf32>
    %2 = tpu.matmul %0, %1, %cst {dimension_numbers = #tpu.dot_dimension_numbers<[1], [0], [0], [1], [0, 0, 1, 1], [], []>} : vector<16x32xf32>, vector<32x64xf32>, vector<16x64xf32> -> vector<16x64xf32>
    %c0_3 = arith.constant 0 : index
    %c0_4 = arith.constant 0 : index
    %3 = vector.load %arg3[%c0_3, %c0_4] : memref<1x64xf32, #tpu.memory_space<vmem>>, vector<1x64xf32>
    %4 = vector.broadcast %3 : vector<1x64xf32> to vector<16x64xf32>
    %5 = arith.addf %2, %4 : vector<16x64xf32>
    %cst_5 = arith.constant 0.000000e+00 : f32
    %6 = vector.broadcast %cst_5 : f32 to vector<16x64xf32>
    %7 = arith.maximumf %5, %6 : vector<16x64xf32>
    %c0_6 = arith.constant 0 : index
    %c0_7 = arith.constant 0 : index
    %8 = vector.load %arg4[%c0_6, %c0_7] : memref<64x32xf32, #tpu.memory_space<vmem>>, vector<64x32xf32>
    %cst_8 = arith.constant dense<0.000000e+00> : vector<16x32xf32>
    %9 = tpu.matmul %7, %8, %cst_8 {dimension_numbers = #tpu.dot_dimension_numbers<[1], [0], [0], [1], [0, 0, 1, 1], [], []>} : vector<16x64xf32>, vector<64x32xf32>, vector<16x32xf32> -> vector<16x32xf32>
    %c0_9 = arith.constant 0 : index
    %c0_10 = arith.constant 0 : index
    %10 = vector.load %arg5[%c0_9, %c0_10] : memref<1x32xf32, #tpu.memory_space<vmem>>, vector<1x32xf32>
    %11 = vector.broadcast %10 : vector<1x32xf32> to vector<16x32xf32>
    %12 = arith.addf %9, %11 : vector<16x32xf32>
    %cst_11 = arith.constant 0.000000e+00 : f32
    %13 = vector.broadcast %cst_11 : f32 to vector<16x32xf32>
    %14 = arith.maximumf %12, %13 : vector<16x32xf32>
    %c0_12 = arith.constant 0 : index
    %c0_13 = arith.constant 0 : index
    %15 = vector.load %arg6[%c0_12, %c0_13] : memref<32x16xf32, #tpu.memory_space<vmem>>, vector<32x16xf32>
    %cst_14 = arith.constant dense<0.000000e+00> : vector<16x16xf32>
    %16 = tpu.matmul %14, %15, %cst_14 {dimension_numbers = #tpu.dot_dimension_numbers<[1], [0], [0], [1], [0, 0, 1, 1], [], []>} : vector<16x32xf32>, vector<32x16xf32>, vector<16x16xf32> -> vector<16x16xf32>
    %c0_15 = arith.constant 0 : index
    %c0_16 = arith.constant 0 : index
    %17 = vector.load %arg7[%c0_15, %c0_16] : memref<1x16xf32, #tpu.memory_space<vmem>>, vector<1x16xf32>
    %18 = vector.broadcast %17 : vector<1x16xf32> to vector<16x16xf32>
    %19 = arith.addf %16, %18 : vector<16x16xf32>
    %cst_17 = arith.constant 0.000000e+00 : f32
    %20 = vector.broadcast %cst_17 : f32 to vector<16x16xf32>
    %21 = arith.maximumf %19, %20 : vector<16x16xf32>
    %c0_18 = arith.constant 0 : index
    %c0_19 = arith.constant 0 : index
    %22 = vector.load %arg8[%c0_18, %c0_19] : memref<16x10xf32, #tpu.memory_space<vmem>>, vector<16x10xf32>
    %cst_20 = arith.constant dense<0.000000e+00> : vector<16x10xf32>
    %23 = tpu.matmul %21, %22, %cst_20 {dimension_numbers = #tpu.dot_dimension_numbers<[1], [0], [0], [1], [0, 0, 1, 1], [], []>} : vector<16x16xf32>, vector<16x10xf32>, vector<16x10xf32> -> vector<16x10xf32>
    %c0_21 = arith.constant 0 : index
    %c0_22 = arith.constant 0 : index
    %24 = vector.load %arg9[%c0_21, %c0_22] : memref<1x10xf32, #tpu.memory_space<vmem>>, vector<1x10xf32>
    %25 = vector.broadcast %24 : vector<1x10xf32> to vector<16x10xf32>
    %26 = arith.addf %23, %25 : vector<16x10xf32>
    %c0_23 = arith.constant 0 : index
    %c0_24 = arith.constant 0 : index
    %27 = vector.load %arg10[%c0_23, %c0_24] : memref<16x10xf32, #tpu.memory_space<vmem>>, vector<16x10xf32>
    tpu.vector_store %arg10[%c0_23, %c0_24], %26 {strides = array<i32>} : memref<16x10xf32, #tpu.memory_space<vmem>>, vector<16x10xf32>,
    return
  }
  func.func @transform_0(%arg0: i32) -> (i32, i32) {
    %c0_i32 = arith.constant 0 : i32
    %c0_i32_0 = arith.constant 0 : i32
    return %arg0, %c0_i32 : i32, i32
  }
  func.func @transform_1(%arg0: i32) -> (i32, i32) {
    %c0_i32 = arith.constant 0 : i32
    %c0_i32_0 = arith.constant 0 : i32
    %c0_i32_1 = arith.constant 0 : i32
    return %c0_i32, %c0_i32_0 : i32, i32
  }
  func.func @transform_2(%arg0: i32) -> (i32, i32) {
    %c0_i32 = arith.constant 0 : i32
    %c0_i32_0 = arith.constant 0 : i32
    %c0_i32_1 = arith.constant 0 : i32
    return %c0_i32, %c0_i32_0 : i32, i32
  }
  func.func @transform_3(%arg0: i32) -> (i32, i32) {
    %c0_i32 = arith.constant 0 : i32
    %c0_i32_0 = arith.constant 0 : i32
    %c0_i32_1 = arith.constant 0 : i32
    return %c0_i32, %c0_i32_0 : i32, i32
  }
  func.func @transform_4(%arg0: i32) -> (i32, i32) {
    %c0_i32 = arith.constant 0 : i32
    %c0_i32_0 = arith.constant 0 : i32
    %c0_i32_1 = arith.constant 0 : i32
    return %c0_i32, %c0_i32_0 : i32, i32
  }
  func.func @transform_5(%arg0: i32) -> (i32, i32) {
    %c0_i32 = arith.constant 0 : i32
    %c0_i32_0 = arith.constant 0 : i32
    %c0_i32_1 = arith.constant 0 : i32
    return %c0_i32, %c0_i32_0 : i32, i32
  }
  func.func @transform_6(%arg0: i32) -> (i32, i32) {
    %c0_i32 = arith.constant 0 : i32
    %c0_i32_0 = arith.constant 0 : i32
    %c0_i32_1 = arith.constant 0 : i32
    return %c0_i32, %c0_i32_0 : i32, i32
  }
  func.func @transform_7(%arg0: i32) -> (i32, i32) {
    %c0_i32 = arith.constant 0 : i32
    %c0_i32_0 = arith.constant 0 : i32
    %c0_i32_1 = arith.constant 0 : i32
    return %c0_i32, %c0_i32_0 : i32, i32
  }
  func.func @transform_8(%arg0: i32) -> (i32, i32) {
    %c0_i32 = arith.constant 0 : i32
    %c0_i32_0 = arith.constant 0 : i32
    %c0_i32_1 = arith.constant 0 : i32
    return %c0_i32, %c0_i32_0 : i32, i32
  }
  func.func @transform_9(%arg0: i32) -> (i32, i32) {
    %c0_i32 = arith.constant 0 : i32
    %c0_i32_0 = arith.constant 0 : i32
    return %arg0, %c0_i32 : i32, i32
  }
}

</mosaic_0001>

<bundles_post_ra>
// kernel: model5_forward.1
= control target key start
LH: loop header
LB: loop body
LE: loop exit
PB: predicated region body
PF: predicated region fallthrough
CT: control target
= control target key end

     0   :  { %vm46_vm0 = vcmask 261120   ;;  %s723_s0 = inlined_call_operand.vmem [shape: f32[16,32], index: 0, kind: input, shape index: {}]   ;;  %s724_s1 = inlined_call_operand.vmem [shape: f32[32,64], index: 1, kind: input, shape index: {}]   ;;  %s725_s2 = inlined_call_operand.vmem [shape: f32[1,64], index: 2, kind: input, shape index: {}]   ;;  %s726_s3 = inlined_call_operand.vmem [shape: f32[64,32], index: 3, kind: input, shape index: {}]   ;;  %s727_s4 = inlined_call_operand.vmem [shape: f32[1,32], index: 4, kind: input, shape index: {}]   ;;  %s728_s5 = inlined_call_operand.vmem [shape: f32[32,16], index: 5, kind: input, shape index: {}]   ;;  %s729_s6 = inlined_call_operand.vmem [shape: f32[1,16], index: 6, kind: input, shape index: {}]   ;;  %s730_s7 = inlined_call_operand.vmem [shape: f32[16,10], index: 7, kind: input, shape index: {}]   ;;  %s731_s8 = inlined_call_operand.vmem [shape: f32[1,10], index: 8, kind: input, shape index: {}]   ;;  %s732_s9 = inlined_call_operand.hbm [shape: f32[16,10], index: 9, kind: output, shape index: {}]  }
   0x1   :  { %v35_v0 = vld [vmem:[%s724_s1] sm:$0xff]  ;;  %v36_v1 = vld [vmem:[%s724_s1 + $0x8] sm:$0xff]  ;;  %v37_v2 = vld [vmem:[%s724_s1 + $0x10] sm:$0xff] }
   0x2   :  { %v519_v3 = vpack.c.bf16 %v36_v1, %v35_v0  ;;  %v38_v4 = vld [vmem:[%s724_s1 + $0x18] sm:$0xff]  ;;  %v33_v5 = vld [vmem:[%s723_s0] sm:$0xff]  ;;  %v131_v8 = vld [vmem:[%s726_s3 + $0x8] sm:$0xff] }
   0x3   :  { %v523_v6 = vpack.c.bf16 %v38_v4, %v37_v2  ;;  %479 = vmatprep.mubr.msk.f32.mxu0 %vm46_vm0, %v33_v5  ;;  %v130_v7 = vld [vmem:[%s726_s3] sm:$0xff]  ;;  %v132_v9 = vld [vmem:[%s726_s3 + $0x10] sm:$0xff]  ;;  %v133_v11 = vld [vmem:[%s726_s3 + $0x18] sm:$0xff] }
   0x4   :  { %520 = vmatprep.subr.bf16.mxu0 %v519_v3  ;;  %v527_v10 = vpack.c.bf16 %v131_v8, %v130_v7  ;;  %v531_v12 = vpack.c.bf16 %v133_v11, %v132_v9  ;;  %v134_v13 = vld [vmem:[%s726_s3 + $0x20] sm:$0xff]  ;;  %v135_v14 = vld [vmem:[%s726_s3 + $0x28] sm:$0xff] }
   0x5   :  { %522 = vmatpush3.bf16.msra.mxu0 %v519_v3 }
   0x6   :  { %14 = vsyncpa [#allocation3], 0  ;;  %524 = vmatprep.subr.bf16.mxu0 %v523_v6  ;;  %528 = vmatprep.subr.bf16.mxu1 %v527_v10  ;;  %v535_v15 = vpack.c.bf16 %v135_v14, %v134_v13  ;;  %v34_v16 = vld [vmem:[%s723_s0 + $0x8] sm:$0xff]  ;;  %v136_v17 = vld [vmem:[%s726_s3 + $0x30] sm:$0xff]  ;;  %vm145_vm1 = vcmask 523264   ;;  %vm332_vm2 = vcmask 130048  }
   0x7   :  { %530 = vmatpush3.bf16.msra.mxu1 %v527_v10  ;;  %v137_v18 = vld [vmem:[%s726_s3 + $0x38] sm:$0xff]  ;;  %v229_v20 = vld [vmem:[%s728_s5] sm:$0xff]  ;;  %v230_v21 = vld [vmem:[%s728_s5 + $0x8] sm:$0xff]  ;;  %vm414_vm3 = vcmask 80896  }
   0x8   :  { %532 = vmatprep.subr.bf16.mxu1 %v531_v12  ;;  %v539_v19 = vpack.c.bf16 %v137_v18, %v136_v17  ;;  %v543_v22 = vpack.c.bf16 %v230_v21, %v229_v20  ;;  %v433_v23 = vld [vmem:[%s725_s2] ss:$0 sm:$0xff]  ;;  %v231_v30 = vld [vmem:[%s728_s5 + $0x10] sm:$0xff]  ;;  %v232_v31 = vld [vmem:[%s728_s5 + $0x18] sm:$0xff] }
   0x9   :  { %526 = vmatpush3.bf16.msra.mxu0 %v523_v6  ;;  %v547_v32 = vpack.c.bf16 %v232_v31, %v231_v30  ;;  %v436_v33 = vld [vmem:[%s727_s4] ss:$0 sm:$0xff]  ;;  %v324_v41 = vld [vmem:[%s730_s7 + $0x8] sm:$0xff] }
   0xa   :  { %544 = vmatprep.subr.bf16.mxu0 %v543_v22  ;;  %v323_v40 = vld [vmem:[%s730_s7] sm:$0xff]  ;;  %s582_s7 = smov [#allocation2]  }
   0xb   :  { %534 = vmatpush3.bf16.msra.mxu1 %v531_v12  ;;  %v551_v42 = vpack.c.bf16 %v324_v41, %v323_v40  ;;  %v439_v43 = vld [vmem:[%s729_s6] ss:$0 sm:$0xff]  ;;  %s422_s29 = sshll.u32 %s582_s7, 4  ;;  %s423_s29 = int_to_ptr.vmem [resolvable:$true] %s422_s29 }
   0xc   :  { %480 = vmatmul.mubr.msk.f32.vlgmr.msra.gmra.mrb[0].mxu0 %vm46_vm0, %v34_v16  ;;  %536 = vmatprep.subr.bf16.mxu1 %v535_v15  ;;  %v442_v50 = vld [vmem:[%s731_s8] ss:$0 sm:$0xff]  ;;  %s558_s6 = scalar_lea.vmem %s423_s29, 256  ;;  %p563_p1 = scmp.lt.s32.totalorder %s423_s29, %s423_s29 }
   0xd   :  { %546 = vmatpush3.bf16.msra.mxu0 %v543_v22  ;;  %p559_p0 = scmp.ne.s32.totalorder %s423_s29, %s558_s6  ;;  %p564_p2 = scmp.lt.s32.totalorder %s558_s6, %s558_s6 }
   0xe   :  { %548 = vmatprep.subr.bf16.mxu0 %v547_v32 }
   0xf   :  { %538 = vmatpush3.bf16.msra.mxu1 %v535_v15  ;;  %p565_p3 = por %p564_p2, %p563_p1 }
  0x10   :  { %540 = vmatprep.subr.bf16.mxu1 %v539_v19 }
  0x11   :  { %550 = vmatpush3.bf16.msra.mxu0 %v547_v32  ;;  %p566_p4 = pnand %p565_p3, %p559_p0 }
  0x12   :  { %552 = vmatprep.subr.bf16.mxu0 %v551_v42 }
  0x13   :  { %542 = vmatpush3.bf16.msra.mxu1 %v539_v19 }
  0xdf   :  { %v481_v24 = vpop.f32.mrb[0].mxu0 }
  0xe0   :  { %v125_v25 = vadd.f32 %v481_v24, %v433_v23  ;;  %v119_v26 = vpop.f32.mrb[1].mxu0 }
  0xe1   :  { %v120_v27 = vadd.f32 %v433_v23, %v119_v26 }
  0xe2   :  { %v129_v29 = vmax.f32 %v125_v25, 0.0 }
  0xe3   :  { %v128_v28 = vmax.f32 %v120_v27, 0.0 }
  0xe5   :  { %498 = vmatprep.mubr.msk.f32.mxu1 %vm145_vm1, %v128_v28 }
  0xe6   :  { %499 = vmatmul.mubr.msk.f32.vlgmr.msra.gmra.mrb[0].mxu1 %vm145_vm1, %v129_v29 }
 0x1b9   :  { %v500_v34 = vpop.f32.mrb[0].mxu1 }
 0x1ba   :  { %v224_v35 = vadd.f32 %v500_v34, %v436_v33  ;;  %v218_v36 = vpop.f32.mrb[1].mxu1 }
 0x1bb   :  { %v219_v37 = vadd.f32 %v436_v33, %v218_v36 }
 0x1bc   :  { %v228_v39 = vmax.f32 %v224_v35, 0.0 }
 0x1bd   :  { %v227_v38 = vmax.f32 %v219_v37, 0.0 }
 0x1bf   :  { %509 = vmatprep.mubr.msk.f32.mxu0 %vm46_vm0, %v227_v38 }
 0x1c0   :  { %510 = vmatmul.mubr.msk.f32.vlgmr.msra.gmra.mrb[2].mxu0 %vm46_vm0, %v228_v39 }
 0x1c1   :  { %554 = vmatpush3.bf16.msra.mxu0 %v551_v42 }
 0x293   :  { %v511_v44 = vpop.f32.mrb[2].mxu0 }
 0x294   :  { %v318_v45 = vadd.f32 %v511_v44, %v439_v43  ;;  %v312_v46 = vpop.f32.mrb[3].mxu0 }
 0x295   :  { %v313_v47 = vadd.f32 %v439_v43, %v312_v46 }
 0x296   :  { %v322_v49 = vmax.f32 %v318_v45, 0.0 }
 0x297   :  { %v321_v48 = vmax.f32 %v313_v47, 0.0 }
 0x299   :  { %516 = vmatprep.mubr.msk.f32.mxu0 %vm332_vm2, %v321_v48 }
 0x29a   :  { %517 = vmatmul.mubr.msk.f32.vlgmr.msra.gmra.mrb[4].mxu0 %vm332_vm2, %v322_v49 }
 0x36d   :  { %v518_v51 = vpop.f32.mrb[4].mxu0 }
 0x36e   :  { %v411_v52 = vadd.f32 %v518_v51, %v442_v50  ;;  %v405_v53 = vpop.f32.mrb[5].mxu0 }
 0x36f   :  { %v406_v54 = vadd.f32 %v442_v50, %v405_v53 }
 0x370   :  { %416 = vst.msk [vmem:[#allocation2 + $0x8] sm:$0xff] %vm414_vm3, %v411_v52 }
 0x371   :  { %415 = vst.msk [vmem:[#allocation2] sm:$0xff] %vm414_vm3, %v406_v54 }
 0x372   :  { %569 = shalt.err (!%p566_p4)
}
 0x373   :  { %s570_s8 = scalar_lea.hbm %s732_s9, 256 }
 0x374   :  { %p571_p5 = scmp.ne.s32.totalorder %s732_s9, %s570_s8  ;;  %p574_p6 = scmp.lt.u32.totalorder %s570_s8, %s732_s9 }
 0x376   :  { %p576_p7 = pnand %p574_p6, %p571_p5 }
 0x378   :  { %579 = shalt.err (!%p576_p7)
}
 0x379   :  { %s583_s15 = smov 128   ;;  %s584_s16 = smov 8  }
 0x37a   :  { %428 = dma.vmem_to_hbm [thread:$0]  %s423_s29, 256, %s732_s9, [#allocation3], %s583_s15, %s583_s15, %s584_s16  }
 0x37b   :  { %580 = dma.done.wait [#allocation3], 256  }
 0x37c   :  { %581 = vsyncadd [#allocation3], 4294967040 }
 0x37d   :  { %432 = vsyncpa [#allocation3], 1 }

</bundles_post_ra>
